<compile_context>
chip_gen: v6e
topology: v6e:2x2x1
jax: 0.10.0
libtpu: 0.0.40
codegen_flags: <defaults>
</compile_context>

<pallas_src>
import jax
import jax.numpy as jnp
from jax.experimental import pallas as pl
from jax.experimental.pallas import tpu as pltpu


def _classifier_kernel(w_ref, b_ref, x_ref, o_ref):
    # w_ref: SMEM (2,)  f32   (weights of Linear(2 -> 1))
    # b_ref: SMEM (1,)  f32   (bias)
    # x_ref: VMEM (2, TILE_B) f32   -- batch on the lane axis
    # o_ref: VMEM (1, TILE_B) f32   -- lane-dense output tile
    w0 = w_ref[0]
    w1 = w_ref[1]
    bb = b_ref[0]
    x0 = x_ref[0:1, :]                       # (1, TILE_B)
    x1 = x_ref[1:2, :]                       # (1, TILE_B)
    z = w0 * x0 + w1 * x1 + bb               # two VPU FMAs, no MXU
    o_ref[...] = jax.nn.sigmoid(z).astype(o_ref.dtype)


def classifier_forward(x, w, b, *, tile_b_max=262144):
    """x: [B, 2] f32, w: [2, 1] f32 (transposed vs PyTorch's [1, 2]), b: [1] f32.

    Returns sigmoid(x @ w + b) with shape [B, 1] (matches nn.Linear(2,1)+sigmoid).
    """
    B = x.shape[0]
    lane = 128

    # Lane-dense tiling of the batch: tile is a multiple of 128 lanes, capped
    # at ~2 MiB per input buffer so double-buffered tiles fit every chip's
    # default scoped-VMEM (v5e 16 MiB / v6e 32 MiB / v7x 32 MiB).
    b_pad_lane = ((B + lane - 1) // lane) * lane
    tile_b = min(tile_b_max, b_pad_lane)
    n_tiles = pl.cdiv(B, tile_b)
    b_pad = n_tiles * tile_b

    # Wrapper-side layout plumbing: batch onto the lane axis, pad ragged tail.
    xt = jnp.pad(x.T.astype(jnp.float32), ((0, 0), (0, b_pad - B)))   # [2, B_pad]
    w_s = w.reshape(2).astype(jnp.float32)                            # SMEM scalars
    b_s = b.reshape(1).astype(jnp.float32)

    out_t = pl.pallas_call(
        _classifier_kernel,
        out_shape=jax.ShapeDtypeStruct((1, b_pad), jnp.float32),
        grid_spec=pltpu.PrefetchScalarGridSpec(
            num_scalar_prefetch=0,
            grid=(n_tiles,),
            in_specs=[
                pl.BlockSpec(memory_space=pltpu.MemorySpace.SMEM),   # w (2,)
                pl.BlockSpec(memory_space=pltpu.MemorySpace.SMEM),   # b (1,)
                pl.BlockSpec((2, tile_b), lambda i: (0, i)),         # x^T tile
            ],
            out_specs=pl.BlockSpec((1, tile_b), lambda i: (0, i)),   # lane-dense out
        ),
        compiler_params=pltpu.CompilerParams(
            dimension_semantics=("parallel",),                        # megacore on v7x
        ),
    )(w_s, b_s, xt)

    # Back to the PyTorch [B, 1] layout, dropping padding.
    return out_t.reshape(b_pad, 1)[:B]


def reference_forward(x, w, b):
    return jax.nn.sigmoid(x @ w + b.reshape(1, 1))


if __name__ == "__main__":
    key = jax.random.PRNGKey(0)
    kx, kw, kb = jax.random.split(key, 3)

    batch = 8
    # Parameters matching nn.Linear(2, 1):
    #   weight: [1, 2] in PyTorch -> stored here transposed as [2, 1]
    #   bias:   [1]
    x = jax.random.normal(kx, (batch, 2), dtype=jnp.float32)
    w = jax.random.normal(kw, (2, 1), dtype=jnp.float32) * 0.5
    b = jax.random.normal(kb, (1,), dtype=jnp.float32) * 0.1

    out = classifier_forward(x, w, b)
    out = jax.block_until_ready(out)

    ref = reference_forward(x, w, b)
    assert out.shape == (batch, 1), out.shape
    assert jnp.allclose(out, ref, atol=1e-5, rtol=1e-5)

    print("KERNEL_OK")
</pallas_src>

<mosaic_0001>
module attributes {stable_mosaic.version = 11 : i64} {
  func.func @_classifier_kernel(%arg0: i32, %arg1: memref<2xf32, #tpu.memory_space<smem>>, %arg2: memref<1xf32, #tpu.memory_space<smem>>, %arg3: memref<2x128xf32, #tpu.memory_space<vmem>>, %arg4: memref<1x128xf32, #tpu.memory_space<vmem>>) attributes {dimension_semantics = [#tpu.dimension_semantics<parallel>], iteration_bounds = array<i64: 1>, scalar_prefetch = 0 : i64, scratch_operands = 0 : i64, tpu.core_type = #tpu.core_type<tc>, window_params = [{transform_indices = @transform_0, window_bounds = array<i64: 2>}, {transform_indices = @transform_1, window_bounds = array<i64: 1>}, {transform_indices = @transform_2, window_bounds = array<i64: 2, 128>}, {transform_indices = @transform_3, window_bounds = array<i64: 1, 128>}]} {
    %c0 = arith.constant 0 : index
    %0 = memref.load %arg1[%c0] : memref<2xf32, #tpu.memory_space<smem>>
    %c1 = arith.constant 1 : index
    %1 = memref.load %arg1[%c1] : memref<2xf32, #tpu.memory_space<smem>>
    %c0_0 = arith.constant 0 : index
    %2 = memref.load %arg2[%c0_0] : memref<1xf32, #tpu.memory_space<smem>>
    %c0_1 = arith.constant 0 : index
    %c0_2 = arith.constant 0 : index
    %3 = vector.load %arg3[%c0_1, %c0_2] : memref<2x128xf32, #tpu.memory_space<vmem>>, vector<1x128xf32>
    %c1_3 = arith.constant 1 : index
    %c0_4 = arith.constant 0 : index
    %4 = vector.load %arg3[%c1_3, %c0_4] : memref<2x128xf32, #tpu.memory_space<vmem>>, vector<1x128xf32>
    %5 = vector.broadcast %0 : f32 to vector<1x128xf32>
    %6 = arith.mulf %5, %3 : vector<1x128xf32>
    %7 = vector.broadcast %1 : f32 to vector<1x128xf32>
    %8 = arith.mulf %7, %4 : vector<1x128xf32>
    %9 = arith.addf %6, %8 : vector<1x128xf32>
    %10 = vector.broadcast %2 : f32 to vector<1x128xf32>
    %11 = arith.addf %9, %10 : vector<1x128xf32>
    %12 = arith.negf %11 : vector<1x128xf32>
    %13 = math.exp %12 : vector<1x128xf32>
    %cst = arith.constant 1.000000e+00 : f32
    %14 = vector.broadcast %cst : f32 to vector<1x128xf32>
    %15 = arith.addf %14, %13 : vector<1x128xf32>
    %16 = arith.divf %14, %15 : vector<1x128xf32>
    %c0_5 = arith.constant 0 : index
    %c0_6 = arith.constant 0 : index
    %17 = vector.load %arg4[%c0_5, %c0_6] : memref<1x128xf32, #tpu.memory_space<vmem>>, vector<1x128xf32>
    tpu.vector_store %arg4[%c0_5, %c0_6], %16 {strides = array<i32>} : memref<1x128xf32, #tpu.memory_space<vmem>>, vector<1x128xf32>,
    return
  }
  func.func @transform_0(%arg0: i32) -> i32 {
    %c0_i32 = arith.constant 0 : i32
    %c0_i32_0 = arith.constant 0 : i32
    return %c0_i32 : i32
  }
  func.func @transform_1(%arg0: i32) -> i32 {
    %c0_i32 = arith.constant 0 : i32
    %c0_i32_0 = arith.constant 0 : i32
    return %c0_i32 : i32
  }
  func.func @transform_2(%arg0: i32) -> (i32, i32) {
    %c0_i32 = arith.constant 0 : i32
    %c0_i32_0 = arith.constant 0 : i32
    return %c0_i32, %arg0 : i32, i32
  }
  func.func @transform_3(%arg0: i32) -> (i32, i32) {
    %c0_i32 = arith.constant 0 : i32
    %c0_i32_0 = arith.constant 0 : i32
    return %c0_i32, %arg0 : i32, i32
  }
}

</mosaic_0001>

<bundles_post_ra>
// kernel: tpu_custom_call.1
= control target key start
LH: loop header
LB: loop body
LE: loop exit
PB: predicated region body
PF: predicated region fallthrough
CT: control target
= control target key end

     0   :  { %9 = vsyncpa [#allocation5], 0  ;;  %s144_s0 = inlined_call_operand.vmem [shape: f32[2], index: 0, kind: input, shape index: {}]   ;;  %s145_s1 = inlined_call_operand.<no memory space> [shape: f32[1], index: 1, kind: input, shape index: {}]   ;;  %s146_s2 = inlined_call_operand.vmem [shape: f32[2,128], index: 2, kind: input, shape index: {}]   ;;  %s147_s3 = inlined_call_operand.hbm [shape: f32[1,128], index: 3, kind: output, shape index: {}]  }
   0x1   :  { %10 = vsyncpa [#allocation4], 0  ;;  %s17_s14 = sshll.u32 %s144_s0, 4  ;;  %s18_s14 = int_to_ptr.vmem [resolvable:$true] %s17_s14 }
   0x2   :  { %s71_s15 = scalar_lea.vmem %s18_s14, 16  ;;  %p76_p1 = scmp.lt.s32.totalorder %s18_s14, %s18_s14 }
   0x3   :  { %p72_p0 = scmp.ne.s32.totalorder %s18_s14, %s71_s15  ;;  %p77_p2 = scmp.lt.s32.totalorder %s71_s15, %s71_s15 }
   0x5   :  { %p78_p3 = por %p77_p2, %p76_p1 }
   0x7   :  { %p79_p4 = pnand %p78_p3, %p72_p0 }
   0x9   :  { %82 = shalt.err (!%p79_p4)
}
   0xa   :  { %s107_s16 = smov [#allocation3]  }
   0xb   :  { %20 = dma.vmem_to_smem %s18_s14, 16, %s107_s16, [#allocation5]  }
   0xc   :  { %103 = dma.done.wait [#allocation5], 16  }
   0xd   :  { %104 = vsyncadd [#allocation5], 4294967280 }
   0xe   :  { %28 = sfence }
   0xf   :  { %s29_s17 = sld [smem:[#allocation3]]  ;;  %v32_v0 = vld [vmem:[%s146_s2] sm:$0x1]  ;;  %v33_v1 = vld [vmem:[%s146_s2 + $0x1] sm:$0x1]  ;;  %v39_v6 = vstv %s145_s1  ;;  %s108_s24 = smov [#allocation6]  }
  0x10   :  { %s63_s18 = sld [smem:[#allocation3 + $0x1]]  ;;  %s54_s25 = sshll.u32 %s108_s24, 4  ;;  %s55_s25 = int_to_ptr.vmem [resolvable:$true] %s54_s25 }
  0x11   :  { %s83_s2 = scalar_lea.vmem %s55_s25, 16  ;;  %s87_s26 = scalar_lea.vmem %s55_s25, 32 }
  0x12   :  { %p84_p5 = scmp.ne.s32.totalorder %s55_s25, %s83_s2  ;;  %p88_p6 = scmp.lt.s32.totalorder %s55_s25, %s55_s25 }
  0x13   :  { %p89_p7 = scmp.lt.s32.totalorder %s87_s26, %s83_s2 }
  0x15   :  { %v34_v2 = vstv %s29_s17  ;;  %p90_p8 = por %p89_p7, %p88_p6 }
  0x16   :  { %v35_v3 = vmul.f32 %v34_v2, %v32_v0  ;;  %v36_v4 = vstv %s63_s18 }
  0x17   :  { %v37_v5 = vmul.f32 %v36_v4, %v33_v1  ;;  %p91_p9 = pnand %p90_p8, %p84_p5 }
  0x19   :  { %v38_v7 = vadd.f32 %v37_v5, %v35_v3 }
  0x1b   :  { %v40_v8 = vadd.f32 %v39_v6, %v38_v7 }
  0x1d   :  { %v64_v9 = vmul.f32 -1.442695, %v40_v8 }
  0x1f   :  { %67 = vpow2.f32 %v64_v9 }
  0x2c   :  { %v68_v10 = vpop.eup %67 }
  0x2d   :  { %v44_v11 = vadd.f32 1.0, %v68_v10 }
  0x2f   :  { %69 = vrcp.f32 %v44_v11 }
  0x3c   :  { %v70_v12 = vpop.eup %69 }
  0x3d   :  { %47 = vst [vmem:[#allocation6] sm:$0x1] %v70_v12 }
  0x3e   :  { %94 = shalt.err (!%p91_p9)
}
  0x3f   :  { %57 = dma.vmem_to_hbm [thread:$0]  %s55_s25, 16, %s147_s3, [#allocation4]  }
  0x40   :  { %105 = dma.done.wait [#allocation4], 16  }
  0x41   :  { %106 = vsyncadd [#allocation4], 4294967280 }
  0x42   :  { %61 = vsyncpa [#allocation4], 1 }
  0x43   :  { %62 = vsyncpa [#allocation5], 1 }

</bundles_post_ra>
